<compile_context>
chip_gen: v7x
topology: tpu7x:2x2x1
jax: 0.10.0
libtpu: 0.0.40
codegen_flags: <defaults>
</compile_context>

<pallas_src>
import functools

import jax
import jax.numpy as jnp
from jax.experimental import pallas as pl
from jax.experimental.pallas import tpu as pltpu


# ---------------------------------------------------------------------------
# Fused kernel: center over batch, accumulate B x B Gram matrices over D
# tiles, finalize (normalize by row norms + Frobenius inner product) on the
# last grid step.
# ---------------------------------------------------------------------------
def _diff_loss_kernel(x1_ref, x2_ref, o_ref, g1_acc, g2_acc, *, inv_count):
    t = pl.program_id(0)

    @pl.when(t == 0)
    def _():
        g1_acc[...] = jnp.zeros_like(g1_acc)
        g2_acc[...] = jnp.zeros_like(g2_acc)

    # Inputs stay in their native dtype in HBM; cast to f32 only in VMEM.
    x1 = x1_ref[...].astype(jnp.float32)  # (B, td1)
    x2 = x2_ref[...].astype(jnp.float32)  # (B, td2)

    # Center over the batch dimension.  The mean is per feature column, so a
    # tile-local centering over the full batch is exact.
    x1c = x1 - jnp.mean(x1, axis=0, keepdims=True)
    x2c = x2 - jnp.mean(x2, axis=0, keepdims=True)

    # Accumulate centered Gram matrices; MXU contraction dim is D (large K).
    dims = (((1,), (1,)), ((), ()))
    g1_acc[...] += jax.lax.dot_general(
        x1c, x1c, dims, preferred_element_type=jnp.float32
    )
    g2_acc[...] += jax.lax.dot_general(
        x2c, x2c, dims, preferred_element_type=jnp.float32
    )

    @pl.when(t == pl.num_programs(0) - 1)
    def _():
        g1 = g1_acc[...]  # (B, B)
        g2 = g2_acc[...]
        B = g1.shape[0]
        row = jax.lax.broadcasted_iota(jnp.int32, (B, B), 0)
        col = jax.lax.broadcasted_iota(jnp.int32, (B, B), 1)
        eye = (row == col).astype(jnp.float32)

        # Row L2 norms are the sqrt of the Gram diagonals.  Extract them along
        # both axes with masked reductions (avoids a small-array transpose /
        # relayout inside the kernel).
        n1r = jnp.sqrt(jnp.sum(g1 * eye, axis=1, keepdims=True))  # (B, 1)
        n1c = jnp.sqrt(jnp.sum(g1 * eye, axis=0, keepdims=True))  # (1, B)
        n2r = jnp.sqrt(jnp.sum(g2 * eye, axis=1, keepdims=True))
        n2c = jnp.sqrt(jnp.sum(g2 * eye, axis=0, keepdims=True))

        eps = 1e-6
        s1 = pl.reciprocal(n1r + eps) * pl.reciprocal(n1c + eps)  # (B, B) bcast
        s2 = pl.reciprocal(n2r + eps) * pl.reciprocal(n2c + eps)

        # loss = <G1_norm, G2_norm>_F / (D1 * D2)
        o_ref[...] = jnp.sum((g1 * s1) * (g2 * s2), keepdims=True) * inv_count


def _num_d_tiles(B, D1, D2, itemsize, budget_bytes=8 << 20):
    """Number of D tiles so a double-buffered (x1, x2) tile pair stays under
    `budget_bytes` (safe for v7x's smaller VMEM) while keeping per-tile lane
    widths 128-aligned.  Bigger tiles amortize per-grid-step overhead for this
    memory-bound kernel."""
    nt = 1
    while True:
        tile_bytes = 2 * B * (D1 // nt + D2 // nt) * itemsize
        if tile_bytes <= budget_bytes:
            break
        n2 = nt * 2
        if (D1 % n2) or (D2 % n2) or (D1 // n2) % 128 or (D2 // n2) % 128:
            break  # cannot split further while staying lane-aligned
        nt = n2
    return nt


# ---------------------------------------------------------------------------
# DiffLoss forward: flatten to (B, -1) in JAX, then one fused Pallas call.
# ---------------------------------------------------------------------------
def diff_loss(input1, input2):
    B = input1.shape[0]
    # Keep native dtype in HBM (halves read traffic for bf16); cast in-kernel.
    x1 = jnp.reshape(input1, (B, -1))
    x2 = jnp.reshape(input2, (B, -1))
    D1 = x1.shape[1]
    D2 = x2.shape[1]

    itemsize = max(jnp.dtype(x1.dtype).itemsize, jnp.dtype(x2.dtype).itemsize)
    nt = _num_d_tiles(B, D1, D2, itemsize)
    td1 = D1 // nt
    td2 = D2 // nt

    kernel = functools.partial(
        _diff_loss_kernel,
        inv_count=float(1.0 / (D1 * D2)),  # baked as a literal, not a captured
        # array constant.
    )

    out = pl.pallas_call(
        kernel,
        out_shape=jax.ShapeDtypeStruct((1, 1), jnp.float32),
        grid_spec=pltpu.PrefetchScalarGridSpec(
            num_scalar_prefetch=0,
            grid=(nt,),
            in_specs=[
                pl.BlockSpec((B, td1), lambda t: (0, t)),
                pl.BlockSpec((B, td2), lambda t: (0, t)),
            ],
            out_specs=pl.BlockSpec((1, 1), lambda t: (0, 0)),
            scratch_shapes=[
                pltpu.VMEM((B, B), jnp.float32),  # G1 accumulator
                pltpu.VMEM((B, B), jnp.float32),  # G2 accumulator
            ],
        ),
        # Accumulators persist across the D-tile axis -> must be "arbitrary".
        compiler_params=pltpu.CompilerParams(
            dimension_semantics=("arbitrary",),
            vmem_limit_bytes=32 << 20,
        ),
    )(x1, x2)
    return out[0, 0]


# ---------------------------------------------------------------------------
# Pure-JAX reference (mirrors the PyTorch forward exactly).
# ---------------------------------------------------------------------------
def diff_loss_ref(input1, input2):
    B = input1.shape[0]
    x1 = jnp.reshape(input1, (B, -1)).astype(jnp.float32)
    x2 = jnp.reshape(input2, (B, -1)).astype(jnp.float32)
    x1 = x1 - jnp.mean(x1, axis=0, keepdims=True)
    x2 = x2 - jnp.mean(x2, axis=0, keepdims=True)
    n1 = jnp.linalg.norm(x1, axis=1, keepdims=True)
    n2 = jnp.linalg.norm(x2, axis=1, keepdims=True)
    x1 = x1 / (n1 + 1e-6)
    x2 = x2 / (n2 + 1e-6)
    return jnp.mean(jnp.square(x1.T @ x2))


if __name__ == "__main__":
    key = jax.random.PRNGKey(0)
    k1, k2 = jax.random.split(key)
    # input1: NCHW (2, 4, 16, 16) -> flattened D1 = 1024
    # input2: NCHW (2, 2, 16, 16) -> flattened D2 = 512
    input1 = jax.random.normal(k1, (2, 4, 16, 16), dtype=jnp.float32)
    input2 = jax.random.normal(k2, (2, 2, 16, 16), dtype=jnp.float32)

    out = jax.block_until_ready(diff_loss(input1, input2))
    ref = jax.block_until_ready(diff_loss_ref(input1, input2))

    assert jnp.allclose(out, ref, rtol=1e-4, atol=1e-6), (out, ref)
    print("KERNEL_OK")
</pallas_src>

<mosaic_0001>
module attributes {stable_mosaic.version = 11 : i64} {
  func.func @_diff_loss_kernel(%arg0: i32, %arg1: memref<2x1024xf32, #tpu.memory_space<vmem>>, %arg2: memref<2x512xf32, #tpu.memory_space<vmem>>, %arg3: memref<1x1xf32, #tpu.memory_space<vmem>>, %arg4: memref<2x2xf32, #tpu.memory_space<vmem>>, %arg5: memref<2x2xf32, #tpu.memory_space<vmem>>) attributes {dimension_semantics = [#tpu.dimension_semantics<arbitrary>], iteration_bounds = array<i64: 1>, scalar_prefetch = 0 : i64, scratch_operands = 2 : i64, tpu.core_type = #tpu.core_type<tc>, window_params = [{transform_indices = @transform_0, window_bounds = array<i64: 2, 1024>}, {transform_indices = @transform_1, window_bounds = array<i64: 2, 512>}, {pipeline_mode = #tpu.pipeline_mode<synchronous>, transform_indices = @transform_2, window_bounds = array<i64: 1, 1>}]} {
    %c0_i32 = arith.constant 0 : i32
    %0 = arith.cmpi eq, %arg0, %c0_i32 : i32
    %1 = arith.extui %0 : i1 to i32
    %c0_i32_0 = arith.constant 0 : i32
    %2 = arith.cmpi ne, %1, %c0_i32_0 : i32
    scf.if %2 {
      %cst_19 = arith.constant 0.000000e+00 : f32
      %28 = vector.broadcast %cst_19 : f32 to vector<2x2xf32>
      %c0_20 = arith.constant 0 : index
      %c0_21 = arith.constant 0 : index
      %29 = vector.load %arg4[%c0_20, %c0_21] : memref<2x2xf32, #tpu.memory_space<vmem>>, vector<2x2xf32>
      tpu.vector_store %arg4[%c0_20, %c0_21], %28 {strides = array<i32>} : memref<2x2xf32, #tpu.memory_space<vmem>>, vector<2x2xf32>,
      %cst_22 = arith.constant 0.000000e+00 : f32
      %30 = vector.broadcast %cst_22 : f32 to vector<2x2xf32>
      %c0_23 = arith.constant 0 : index
      %c0_24 = arith.constant 0 : index
      %31 = vector.load %arg5[%c0_23, %c0_24] : memref<2x2xf32, #tpu.memory_space<vmem>>, vector<2x2xf32>
      tpu.vector_store %arg5[%c0_23, %c0_24], %30 {strides = array<i32>} : memref<2x2xf32, #tpu.memory_space<vmem>>, vector<2x2xf32>,
    } else {
    }
    %c0 = arith.constant 0 : index
    %c0_1 = arith.constant 0 : index
    %3 = vector.load %arg1[%c0, %c0_1] : memref<2x1024xf32, #tpu.memory_space<vmem>>, vector<2x1024xf32>
    %c0_2 = arith.constant 0 : index
    %c0_3 = arith.constant 0 : index
    %4 = vector.load %arg2[%c0_2, %c0_3] : memref<2x512xf32, #tpu.memory_space<vmem>>, vector<2x512xf32>
    %cst = arith.constant dense<0.000000e+00> : vector<1024xf32>
    %5 = vector.multi_reduction <add>, %3, %cst [0] : vector<2x1024xf32> to vector<1024xf32>
    %6 = vector.shape_cast %5 : vector<1024xf32> to vector<1x1024xf32>
    %cst_4 = arith.constant 2.000000e+00 : f32
    %7 = vector.broadcast %cst_4 : f32 to vector<1x1024xf32>
    %8 = arith.divf %6, %7 : vector<1x1024xf32>
    %9 = vector.broadcast %8 : vector<1x1024xf32> to vector<2x1024xf32>
    %10 = arith.subf %3, %9 : vector<2x1024xf32>
    %cst_5 = arith.constant dense<0.000000e+00> : vector<512xf32>
    %11 = vector.multi_reduction <add>, %4, %cst_5 [0] : vector<2x512xf32> to vector<512xf32>
    %12 = vector.shape_cast %11 : vector<512xf32> to vector<1x512xf32>
    %cst_6 = arith.constant 2.000000e+00 : f32
    %13 = vector.broadcast %cst_6 : f32 to vector<1x512xf32>
    %14 = arith.divf %12, %13 : vector<1x512xf32>
    %15 = vector.broadcast %14 : vector<1x512xf32> to vector<2x512xf32>
    %16 = arith.subf %4, %15 : vector<2x512xf32>
    %c0_7 = arith.constant 0 : index
    %c0_8 = arith.constant 0 : index
    %17 = vector.load %arg4[%c0_7, %c0_8] : memref<2x2xf32, #tpu.memory_space<vmem>>, vector<2x2xf32>
    %cst_9 = arith.constant dense<0.000000e+00> : vector<2x2xf32>
    %18 = tpu.matmul %10, %10, %cst_9 {dimension_numbers = #tpu.dot_dimension_numbers<[1], [1], [0], [0], [0, 0, 1, 0], [], []>} : vector<2x1024xf32>, vector<2x1024xf32>, vector<2x2xf32> -> vector<2x2xf32>
    %19 = arith.addf %17, %18 : vector<2x2xf32>
    %c0_10 = arith.constant 0 : index
    %c0_11 = arith.constant 0 : index
    %20 = vector.load %arg4[%c0_10, %c0_11] : memref<2x2xf32, #tpu.memory_space<vmem>>, vector<2x2xf32>
    tpu.vector_store %arg4[%c0_10, %c0_11], %19 {strides = array<i32>} : memref<2x2xf32, #tpu.memory_space<vmem>>, vector<2x2xf32>,
    %c0_12 = arith.constant 0 : index
    %c0_13 = arith.constant 0 : index
    %21 = vector.load %arg5[%c0_12, %c0_13] : memref<2x2xf32, #tpu.memory_space<vmem>>, vector<2x2xf32>
    %cst_14 = arith.constant dense<0.000000e+00> : vector<2x2xf32>
    %22 = tpu.matmul %16, %16, %cst_14 {dimension_numbers = #tpu.dot_dimension_numbers<[1], [1], [0], [0], [0, 0, 1, 0], [], []>} : vector<2x512xf32>, vector<2x512xf32>, vector<2x2xf32> -> vector<2x2xf32>
    %23 = arith.addf %21, %22 : vector<2x2xf32>
    %c0_15 = arith.constant 0 : index
    %c0_16 = arith.constant 0 : index
    %24 = vector.load %arg5[%c0_15, %c0_16] : memref<2x2xf32, #tpu.memory_space<vmem>>, vector<2x2xf32>
    tpu.vector_store %arg5[%c0_15, %c0_16], %23 {strides = array<i32>} : memref<2x2xf32, #tpu.memory_space<vmem>>, vector<2x2xf32>,
    %c0_i32_17 = arith.constant 0 : i32
    %25 = arith.cmpi eq, %arg0, %c0_i32_17 : i32
    %26 = arith.extui %25 : i1 to i32
    %c0_i32_18 = arith.constant 0 : i32
    %27 = arith.cmpi ne, %26, %c0_i32_18 : i32
    scf.if %27 {
      %c0_19 = arith.constant 0 : index
      %c0_20 = arith.constant 0 : index
      %28 = vector.load %arg4[%c0_19, %c0_20] : memref<2x2xf32, #tpu.memory_space<vmem>>, vector<2x2xf32>
      %c0_21 = arith.constant 0 : index
      %c0_22 = arith.constant 0 : index
      %29 = vector.load %arg5[%c0_21, %c0_22] : memref<2x2xf32, #tpu.memory_space<vmem>>, vector<2x2xf32>
      %30 = tpu.iota {dimensions = array<i32: 0>} : vector<2x2xi32>
      %31 = tpu.iota {dimensions = array<i32: 1>} : vector<2x2xi32>
      %32 = arith.cmpi eq, %30, %31 : vector<2x2xi32>
      %33 = arith.extui %32 : vector<2x2xi1> to vector<2x2xi32>
      %34 = arith.sitofp %33 : vector<2x2xi32> to vector<2x2xf32>
      %35 = arith.mulf %28, %34 : vector<2x2xf32>
      %cst_23 = arith.constant dense<0.000000e+00> : vector<2xf32>
      %36 = vector.multi_reduction <add>, %35, %cst_23 [1] : vector<2x2xf32> to vector<2xf32>
      %37 = vector.shape_cast %36 : vector<2xf32> to vector<2x1xf32>
      %38 = math.sqrt %37 : vector<2x1xf32>
      %39 = arith.mulf %28, %34 : vector<2x2xf32>
      %cst_24 = arith.constant dense<0.000000e+00> : vector<2xf32>
      %40 = vector.multi_reduction <add>, %39, %cst_24 [0] : vector<2x2xf32> to vector<2xf32>
      %41 = vector.shape_cast %40 : vector<2xf32> to vector<1x2xf32>
      %42 = math.sqrt %41 : vector<1x2xf32>
      %43 = arith.mulf %29, %34 : vector<2x2xf32>
      %cst_25 = arith.constant dense<0.000000e+00> : vector<2xf32>
      %44 = vector.multi_reduction <add>, %43, %cst_25 [1] : vector<2x2xf32> to vector<2xf32>
      %45 = vector.shape_cast %44 : vector<2xf32> to vector<2x1xf32>
      %46 = math.sqrt %45 : vector<2x1xf32>
      %47 = arith.mulf %29, %34 : vector<2x2xf32>
      %cst_26 = arith.constant dense<0.000000e+00> : vector<2xf32>
      %48 = vector.multi_reduction <add>, %47, %cst_26 [0] : vector<2x2xf32> to vector<2xf32>
      %49 = vector.shape_cast %48 : vector<2xf32> to vector<1x2xf32>
      %50 = math.sqrt %49 : vector<1x2xf32>
      %cst_27 = arith.constant 9.99999997E-7 : f32
      %51 = vector.broadcast %cst_27 : f32 to vector<2x1xf32>
      %52 = arith.addf %38, %51 : vector<2x1xf32>
      %53 = tpu.reciprocal %52 : vector<2x1xf32> -> vector<2x1xf32>
      %cst_28 = arith.constant 9.99999997E-7 : f32
      %54 = vector.broadcast %cst_28 : f32 to vector<1x2xf32>
      %55 = arith.addf %42, %54 : vector<1x2xf32>
      %56 = tpu.reciprocal %55 : vector<1x2xf32> -> vector<1x2xf32>
      %57 = vector.broadcast %53 : vector<2x1xf32> to vector<2x2xf32>
      %58 = vector.broadcast %56 : vector<1x2xf32> to vector<2x2xf32>
      %59 = arith.mulf %57, %58 : vector<2x2xf32>
      %cst_29 = arith.constant 9.99999997E-7 : f32
      %60 = vector.broadcast %cst_29 : f32 to vector<2x1xf32>
      %61 = arith.addf %46, %60 : vector<2x1xf32>
      %62 = tpu.reciprocal %61 : vector<2x1xf32> -> vector<2x1xf32>
      %cst_30 = arith.constant 9.99999997E-7 : f32
      %63 = vector.broadcast %cst_30 : f32 to vector<1x2xf32>
      %64 = arith.addf %50, %63 : vector<1x2xf32>
      %65 = tpu.reciprocal %64 : vector<1x2xf32> -> vector<1x2xf32>
      %66 = vector.broadcast %62 : vector<2x1xf32> to vector<2x2xf32>
      %67 = vector.broadcast %65 : vector<1x2xf32> to vector<2x2xf32>
      %68 = arith.mulf %66, %67 : vector<2x2xf32>
      %69 = arith.mulf %28, %59 : vector<2x2xf32>
      %70 = arith.mulf %29, %68 : vector<2x2xf32>
      %71 = arith.mulf %69, %70 : vector<2x2xf32>
      %72 = vector.shape_cast %71 : vector<2x2xf32> to vector<1x2x2xf32>
      %cst_31 = arith.constant dense<0.000000e+00> : vector<1xf32>
      %73 = vector.multi_reduction <add>, %72, %cst_31 [1, 2] : vector<1x2x2xf32> to vector<1xf32>
      %74 = vector.shape_cast %73 : vector<1xf32> to vector<1x1x1xf32>
      %75 = vector.extract %74[0, 0, 0] : f32 from vector<1x1x1xf32>
      %76 = vector.broadcast %75 : f32 to vector<1x1xf32>
      %cst_32 = arith.constant 1.90734863E-6 : f32
      %77 = vector.broadcast %cst_32 : f32 to vector<1x1xf32>
      %78 = arith.mulf %76, %77 : vector<1x1xf32>
      %c0_33 = arith.constant 0 : index
      %c0_34 = arith.constant 0 : index
      %79 = vector.load %arg3[%c0_33, %c0_34] : memref<1x1xf32, #tpu.memory_space<vmem>>, vector<1x1xf32>
      tpu.vector_store %arg3[%c0_33, %c0_34], %78 {strides = array<i32>} : memref<1x1xf32, #tpu.memory_space<vmem>>, vector<1x1xf32>,
    } else {
    }
    return
  }
  func.func @transform_0(%arg0: i32) -> (i32, i32) {
    %c0_i32 = arith.constant 0 : i32
    %c0_i32_0 = arith.constant 0 : i32
    return %c0_i32, %arg0 : i32, i32
  }
  func.func @transform_1(%arg0: i32) -> (i32, i32) {
    %c0_i32 = arith.constant 0 : i32
    %c0_i32_0 = arith.constant 0 : i32
    return %c0_i32, %arg0 : i32, i32
  }
  func.func @transform_2(%arg0: i32) -> (i32, i32) {
    %c0_i32 = arith.constant 0 : i32
    %c0_i32_0 = arith.constant 0 : i32
    %c0_i32_1 = arith.constant 0 : i32
    return %c0_i32, %c0_i32_0 : i32, i32
  }
}

</mosaic_0001>

<bundles_post_ra>
// kernel: tpu_custom_call.1
= control target key start
LH: loop header
LB: loop body
LE: loop exit
PB: predicated region body
PF: predicated region fallthrough
CT: control target
= control target key end

     0   :  { %7 = vsyncpa [#allocation5], 0  ;;  %s1111_s0 = inlined_call_operand.hbm [shape: f32[2,1024], index: 0, kind: input, shape index: {}]   ;;  %s1112_s1 = inlined_call_operand.hbm [shape: f32[2,512], index: 1, kind: input, shape index: {}]   ;;  %s1113_s2 = inlined_call_operand.hbm [shape: f32[1,1], index: 2, kind: output, shape index: {}]  }
   0x1   :  { %8 = vsyncpa [#allocation8], 0 }
   0x2   :  { %9 = vsyncpa [#allocation6], 0  ;;  %s974_s9 = smov [#allocation4]   ;;  %s975_s11 = smov [#allocation7]  }
   0x3   :  { %s16_s10 = sshll.u32 %s974_s9, 4  ;;  %s26_s12 = sshll.u32 %s975_s11, 4  ;;  %s17_s10 = int_to_ptr.vmem [resolvable:$true] %s16_s10  ;;  %s27_s12 = int_to_ptr.vmem [resolvable:$true] %s26_s12 }
   0x4   :  { %s902_s15 = scalar_lea.hbm %s1111_s0, 256 }
   0x5   :  { %p903_p0 = scmp.ne.s32.totalorder %s1111_s0, %s902_s15  ;;  %p906_p1 = scmp.lt.u32.totalorder %s902_s15, %s1111_s0 }
   0x7   :  { %p908_p2 = pnand %p906_p1, %p903_p0 }
   0x9   :  { %911 = shalt.err (!%p908_p2)
}
   0xa   :  { %s912_s20 = scalar_lea.vmem %s17_s10, 256  ;;  %p917_p4 = scmp.lt.s32.totalorder %s17_s10, %s17_s10 }
   0xb   :  { %p913_p3 = scmp.ne.s32.totalorder %s17_s10, %s912_s20  ;;  %p918_p5 = scmp.lt.s32.totalorder %s912_s20, %s912_s20 }
   0xd   :  { %p919_p6 = por %p918_p5, %p917_p4 }
   0xf   :  { %p920_p7 = pnand %p919_p6, %p913_p3 }
  0x11   :  { %923 = shalt.err (!%p920_p7)
}
  0x12   :  { %19 = dma.hbm_to_vmem [thread:$0]  %s1111_s0, 256, %s17_s10, [#allocation5]  }
  0x13   :  { %s924_s25 = scalar_lea.hbm %s1112_s1, 128 }
  0x14   :  { %p925_p8 = scmp.ne.s32.totalorder %s1112_s1, %s924_s25  ;;  %p928_p9 = scmp.lt.u32.totalorder %s924_s25, %s1112_s1 }
  0x16   :  { %p930_p10 = pnand %p928_p9, %p925_p8 }
  0x18   :  { %933 = shalt.err (!%p930_p10)
}
  0x19   :  { %s934_s30 = scalar_lea.vmem %s27_s12, 128  ;;  %p939_p12 = scmp.lt.s32.totalorder %s27_s12, %s27_s12 }
  0x1a   :  { %p935_p11 = scmp.ne.s32.totalorder %s27_s12, %s934_s30  ;;  %p940_p13 = scmp.lt.s32.totalorder %s934_s30, %s934_s30 }
  0x1c   :  { %p941_p0 = por %p940_p13, %p939_p12 }
  0x1e   :  { %p942_p1 = pnand %p941_p0, %p935_p11 }
  0x20   :  { %945 = shalt.err (!%p942_p1)
}
  0x21   :  { %29 = dma.hbm_to_vmem [thread:$0]  %s1112_s1, 128, %s27_s12, [#allocation8]  }
  0x22   :  { %968 = dma.done.wait [#allocation5], 256  }
  0x23   :  { %969 = vsyncadd [#allocation5], 4294967040 }
  0x24   :  { %970 = dma.done.wait [#allocation8], 128  }
  0x25   :  { %971 = vsyncadd [#allocation8], 4294967168  ;;  %v52_v0 = vlaneseq  ;;  %v976_v1 = vmov 1983009808   ;;  %v1024_v6 = vld [vmem:[#allocation4] sm:$0xff]  ;;  %vm90_vm0 = vcmask 1041408  }
  0x26   :  { %v50_v2 = vunpack.c.l.s4 %v976_v1  ;;  %v1026_v7 = vld [vmem:[#allocation4 + $0x8] sm:$0xff]  ;;  %v1028_v8 = vld [vmem:[#allocation7] sm:$0xff]  ;;  %v48_v9 = vcombine.high %v1024_v6, %v1024_v6  ;;  %vm40_vm1 = vcmask 9216   ;;  %s978_s1 = smov [#allocation9]   ;;  %vm857_vm11 = vcmask 0  }
  0x27   :  { %v1019_v3 = vshrl.u32 %v52_v0, 7  ;;  %v65_v11 = vcombine.high %v1026_v7, %v1026_v7  ;;  %v203_v13 = vcombine.high %v1028_v8, %v1028_v8  ;;  %s865_s4 = sshll.u32 %s978_s1, 4  ;;  %s866_s4 = int_to_ptr.vmem [resolvable:$true] %s865_s4 }
  0x28   :  { %v51_v4 = vunpack.c.0.s8 %v50_v2  ;;  %s946_s6 = scalar_lea.vmem %s866_s4, 16  ;;  %s950_s7 = scalar_lea.vmem %s866_s4, 32 }
  0x29   :  { %p947_p2 = scmp.ne.s32.totalorder %s866_s4, %s946_s6  ;;  %p951_p3 = scmp.lt.s32.totalorder %s866_s4, %s866_s4 }
  0x2a   :  { %v1022_v5 = vsub.s32 %v51_v4, %v1019_v3  ;;  %p952_p4 = scmp.lt.s32.totalorder %s950_s7, %s946_s6 }
  0x2c   :  { %v55_v10 = vrot.slane %v1024_v6, %v1022_v5  ;;  %v72_v12 = vrot.slane %v1026_v7, %v1022_v5  ;;  %v1042_v14 = vrot.slane %v1028_v8, %v1022_v5  ;;  %v62_v15 = vrot.slane %v48_v9, %v1022_v5  ;;  %p953_p5 = por %p952_p4, %p951_p3 }
  0x2d   :  { %v79_v18 = vrot.slane %v65_v11, %v1022_v5  ;;  %v1049_v22 = vrot.slane %v203_v13, %v1022_v5 }
  0x2e   :  { %v63_v16 = vcombine.high %v55_v10, %v55_v10  ;;  %v91_v17 = vsel %vm90_vm0, %v55_v10, 0.0  ;;  %v80_v20 = vcombine.high %v72_v12, %v72_v12  ;;  %v119_v21 = vsel %vm90_vm0, %v72_v12, 0.0  ;;  %p954_p6 = pnand %p953_p5, %p947_p2 }
  0x2f   :  { %v92_v19 = vrot.slane %v91_v17, 4  ;;  %v64_v23 = vcombine.high %v62_v15, %v62_v15  ;;  %v105_v25 = vsel %vm90_vm0, %v62_v15, 0.0  ;;  %v81_v26 = vcombine.high %v79_v18, %v79_v18 }
  0x30   :  { %v98_v24 = vsel %vm90_vm0, %v63_v16, 0.0  ;;  %v106_v29 = vrot.slane %v105_v25, 4  ;;  %v120_v30 = vrot.slane %v119_v21, 4  ;;  %v126_v32 = vsel %vm90_vm0, %v80_v20, 0.0 }
  0x31   :  { %v93_v27 = vadd.f32 %v92_v19, %v91_v17  ;;  %v99_v28 = vrot.slane %v98_v24, 4  ;;  %v112_v31 = vsel %vm90_vm0, %v64_v23, 0.0  ;;  %v133_v33 = vsel %vm90_vm0, %v79_v18, 0.0 }
  0x32   :  { %v140_v34 = vsel %vm90_vm0, %v81_v26, 0.0  ;;  %v107_v37 = vadd.f32 %v106_v29, %v105_v25  ;;  %v113_v38 = vrot.slane %v112_v31, 4  ;;  %v121_v39 = vadd.f32 %v120_v30, %v119_v21 }
  0x33   :  { %v94_v35 = vrot.slane %v93_v27, 2  ;;  %v100_v36 = vadd.f32 %v99_v28, %v98_v24  ;;  %v127_v40 = vrot.slane %v126_v32, 4  ;;  %v134_v41 = vrot.slane %v133_v33, 4 }
  0x34   :  { %v141_v42 = vrot.slane %v140_v34, 4  ;;  %v108_v45 = vrot.slane %v107_v37, 2  ;;  %v114_v46 = vadd.f32 %v113_v38, %v112_v31  ;;  %v122_v47 = vrot.slane %v121_v39, 2 }
  0x35   :  { %v95_v43 = vadd.f32 %v94_v35, %v93_v27  ;;  %v101_v44 = vrot.slane %v100_v36, 2  ;;  %v128_v48 = vadd.f32 %v127_v40, %v126_v32  ;;  %v135_v49 = vadd.f32 %v134_v41, %v133_v33 }
  0x36   :  { %v142_v50 = vadd.f32 %v141_v42, %v140_v34  ;;  %v109_v53 = vadd.f32 %v108_v45, %v107_v37  ;;  %v115_v54 = vrot.slane %v114_v46, 2  ;;  %v123_v55 = vadd.f32 %v122_v47, %v121_v39 }
  0x37   :  { %v96_v51 = vrot.slane %v95_v43, 1  ;;  %v102_v52 = vadd.f32 %v101_v44, %v100_v36  ;;  %v129_v56 = vrot.slane %v128_v48, 2  ;;  %v136_v57 = vrot.slane %v135_v49, 2 }
  0x38   :  { %v143_v58 = vrot.slane %v142_v50, 2  ;;  %v110_v61 = vrot.slane %v109_v53, 1  ;;  %v116_v62 = vadd.f32 %v115_v54, %v114_v46  ;;  %v124_v63 = vrot.slane %v123_v55, 1 }
  0x39   :  { %v97_v59 = vadd.f32 %v96_v51, %v95_v43  ;;  %v103_v60 = vrot.slane %v102_v52, 1  ;;  %v130_v1 = vadd.f32 %v129_v56, %v128_v48  ;;  %v137_v2 = vadd.f32 %v136_v57, %v135_v49 }
  0x3a   :  { %v144_v4 = vadd.f32 %v143_v58, %v142_v50  ;;  %v111_v10 = vadd.f32 %v110_v61, %v109_v53  ;;  %v117_v11 = vrot.slane %v116_v62, 1  ;;  %v125_v13 = vadd.f32 %v124_v63, %v123_v55 }
  0x3b   :  { %v104_v9 = vadd.f32 %v103_v60, %v102_v52  ;;  %v148_v12 = vmul.f32 0.5, %v97_v59  ;;  %v131_v15 = vrot.slane %v130_v1, 1  ;;  %v138_v16 = vrot.slane %v137_v2, 1 }
  0x3c   :  { %v145_v17 = vrot.slane %v144_v4, 1  ;;  %v118_v18 = vadd.f32 %v117_v11, %v116_v62  ;;  %v150_v20 = vmul.f32 0.5, %v111_v10  ;;  %v218_v21 = vcombine.high %v1042_v14, %v1042_v14 }
  0x3d   :  { %v149_v19 = vmul.f32 0.5, %v104_v9  ;;  %v132_v23 = vadd.f32 %v131_v15, %v130_v1  ;;  %v139_v24 = vadd.f32 %v138_v16, %v137_v2  ;;  %v152_v26 = vmul.f32 0.5, %v125_v13 }
  0x3e   :  { %v146_v25 = vadd.f32 %v145_v17, %v144_v4  ;;  %v151_v27 = vmul.f32 0.5, %v118_v18  ;;  %v219_v29 = vcombine.high %v1049_v22, %v1049_v22  ;;  %v224_v30 = vsel %vm90_vm0, %v1042_v14, 0.0 }
  0x3f   :  { %v164_v28 = vcombine.low %v148_v12, %v149_v19  ;;  %v153_v31 = vmul.f32 0.5, %v132_v23  ;;  %v154_v32 = vmul.f32 0.5, %v139_v24  ;;  %v225_v34 = vrot.slane %v224_v30, 4 }
  0x40   :  { %v155_v33 = vmul.f32 0.5, %v146_v25  ;;  %v165_v35 = vcombine.low %v150_v20, %v151_v27  ;;  %v231_v37 = vsel %vm90_vm0, %v218_v21, 0.0  ;;  %v238_v38 = vsel %vm90_vm0, %v1049_v22, 0.0 }
  0x41   :  { %v172_v36 = vrot.slane %v164_v28, %v1022_v5  ;;  %v181_v39 = vcombine.low %v152_v26, %v153_v31  ;;  %v226_v41 = vadd.f32 %v225_v34, %v224_v30  ;;  %v232_v42 = vrot.slane %v231_v37, 4 }
  0x42   :  { %v182_v40 = vcombine.low %v154_v32, %v155_v33  ;;  %v179_v43 = vrot.slane %v165_v35, %v1022_v5  ;;  %v239_v44 = vrot.slane %v238_v38, 4  ;;  %v245_v14 = vsel %vm90_vm0, %v219_v29, 0.0 }
  0x43   :  { %v189_v45 = vrot.slane %v181_v39, %v1022_v5  ;;  %v227_v47 = vrot.slane %v226_v41, 2  ;;  %v233_v48 = vadd.f32 %v232_v42, %v231_v37  ;;  %v246_v51 = vrot.slane %v245_v14, 4 }
  0x44   :  { %v196_v46 = vrot.slane %v182_v40, %v1022_v5  ;;  %v180_v49 = vcombine.low %v172_v36, %v179_v43  ;;  %v240_v50 = vadd.f32 %v239_v44, %v238_v38  ;;  %v977_v37 = vmov 0.0  }
  0x45   :  { %v228_v22 = vadd.f32 %v227_v47, %v226_v41  ;;  %v234_v53 = vrot.slane %v233_v48, 2  ;;  %v247_v56 = vadd.f32 %v246_v51, %v245_v14  ;;  %41 = vst.msk [vmem:[#allocation2] sm:$0x3] %vm40_vm1, %v977_v37  ;;  %42 = vst.msk [vmem:[#allocation3] sm:$0x3] %vm40_vm1, %v977_v37 }
  0x46   :  { %v197_v52 = vcombine.low %v189_v45, %v196_v46  ;;  %v200_v54 = vsub.f32 %v1024_v6, %v180_v49  ;;  %v241_v55 = vrot.slane %v240_v50, 2 }
  0x47   :  { %v229_v58 = vrot.slane %v228_v22, 1  ;;  %v235_v59 = vadd.f32 %v234_v53, %v233_v48  ;;  %v248_v63 = vrot.slane %v247_v56, 2  ;;  %v780_v48 = vand.u32 127, %v52_v0 }
  0x48   :  { %v201_v57 = vsub.f32 %v1026_v7, %v197_v52  ;;  %v289_v60 = vrot.slane %v200_v54, %v1022_v5  ;;  %v282_v61 = vcombine.high %v200_v54, %v200_v54  ;;  %v242_v62 = vadd.f32 %v241_v55, %v240_v50 }
  0x49   :  { %v230_v4 = vadd.f32 %v229_v58, %v228_v22  ;;  %v236_v9 = vrot.slane %v235_v59, 1  ;;  %v249_v12 = vadd.f32 %v248_v63, %v247_v56  ;;  %vm781_vm2 = vcmp.eq.s32.totalorder %v1019_v3, %v780_v48 }
  0x4a   :  { %v306_v1 = vrot.slane %v201_v57, %v1022_v5  ;;  %v299_v2 = vcombine.high %v201_v57, %v201_v57  ;;  %v297_v10 = vcombine.high %v289_v60, %v289_v60  ;;  %v296_v11 = vrot.slane %v282_v61, %v1022_v5 }
  0x4b   :  { %v243_v6 = vrot.slane %v242_v62, 1  ;;  %v237_v15 = vadd.f32 %v236_v9, %v235_v59  ;;  %v252_v16 = vmul.f32 0.5, %v230_v4  ;;  %v250_v19 = vrot.slane %v249_v12, 1 }
  0x4c   :  { %v314_v13 = vcombine.high %v306_v1, %v306_v1  ;;  %v313_v7 = vrot.slane %v299_v2, %v1022_v5  ;;  %324 = vmatprep.subr.mxu0 %v297_v10  ;;  %v298_v17 = vcombine.high %v296_v11, %v296_v11  ;;  %388 = vmatprep.mubr.f32.mxu0 %v297_v10  ;;  %v279_v44 = vld [vmem:[#allocation2] sm:$0x3]  ;;  %v875_v49 = vsel %vm781_vm2, 1.0, %v977_v37  ;;  %v607_v53 = vld [vmem:[#allocation3] sm:$0x3] }
  0x4d   :  { %v244_v18 = vadd.f32 %v243_v6, %v242_v62  ;;  %325 = vmatpush1.xpose.msra.mxu0 %v289_v60  ;;  %v253_v21 = vmul.f32 0.5, %v237_v15  ;;  %v251_v23 = vadd.f32 %v250_v19, %v249_v12 }
  0x4e   :  { %v315_v20 = vcombine.high %v313_v7, %v313_v7  ;;  %394 = vmatprep.subr.mxu1 %v298_v17  ;;  %464 = vmatprep.subr.mxu0 %v314_v13 }
  0x4f   :  { %v254_v24 = vmul.f32 0.5, %v244_v18  ;;  %395 = vmatpush1.xpose.msra.mxu1 %v296_v11  ;;  %458 = vmatprep.mubr.f32.mxu1 %v298_v17  ;;  %v260_v25 = vcombine.low %v252_v16, %v253_v21  ;;  %v255_v26 = vmul.f32 0.5, %v251_v23 }
  0x50   :  { %389 = vmatmul.mubr.f32.vlgmr.msra.gmra.mrb[0].mxu0 %v289_v60  ;;  %534 = vmatprep.subr.mxu1 %v315_v20 }
  0x51   :  { %465 = vmatpush1.xpose.msra.mxu0 %v306_v1  ;;  %528 = vmatprep.mubr.f32.mxu0 %v314_v13  ;;  %v261_v27 = vcombine.low %v254_v24, %v255_v26  ;;  %v268_v28 = vrot.slane %v260_v25, %v1022_v5 }
  0x52   :  { %459 = vmatmul.mubr.f32.vlgmr.msra.gmra.mrb[0].mxu1 %v296_v11 }
  0x53   :  { %535 = vmatpush1.xpose.msra.mxu1 %v313_v7  ;;  %598 = vmatprep.mubr.f32.mxu1 %v315_v20  ;;  %v275_v29 = vrot.slane %v261_v27, %v1022_v5 }
  0x54   :  { %529 = vmatmul.mubr.f32.vlgmr.msra.gmra.mrb[2].mxu0 %v306_v1 }
  0x55   :  { %v276_v30 = vcombine.low %v268_v28, %v275_v29 }
  0x56   :  { %599 = vmatmul.mubr.f32.vlgmr.msra.gmra.mrb[2].mxu1 %v313_v7 }
  0x57   :  { %v278_v31 = vsub.f32 %v1028_v8, %v276_v30 }
  0x59   :  { %v616_v32 = vrot.slane %v278_v31, %v1022_v5  ;;  %v609_v33 = vcombine.high %v278_v31, %v278_v31 }
  0x5b   :  { %v624_v34 = vcombine.high %v616_v32, %v616_v32  ;;  %v623_v35 = vrot.slane %v609_v33, %v1022_v5 }
  0x5d   :  { %630 = vmatprep.subr.mxu0 %v624_v34  ;;  %v625_v36 = vcombine.high %v623_v35, %v623_v35  ;;  %694 = vmatprep.mubr.f32.mxu0 %v624_v34 }
  0x5e   :  { %631 = vmatpush1.xpose.msra.mxu0 %v616_v32 }
  0x5f   :  { %700 = vmatprep.subr.mxu1 %v625_v36  ;;  %764 = vmatprep.mubr.f32.mxu1 %v625_v36 }
  0x60   :  { %701 = vmatpush1.xpose.msra.mxu1 %v623_v35 }
  0x61   :  { %695 = vmatmul.mubr.f32.vlgmr.msra.gmra.mrb[4].mxu0 %v616_v32 }
  0x63   :  { %765 = vmatmul.mubr.f32.vlgmr.msra.gmra.mrb[4].mxu1 %v623_v35 }
 0x123   :  { %v390_v8 = vpop.f32.mrb[0].mxu0 }
 0x124   :  { %v392_v38 = vpop.f32.mrb[1].mxu0 }
 0x125   :  { %v460_v39 = vpop.f32.mrb[0].mxu1 }
 0x126   :  { %v461_v40 = vadd.f32 %v460_v39, %v390_v8  ;;  %v462_v5 = vpop.f32.mrb[1].mxu1 }
 0x127   :  { %v530_v41 = vpop.f32.mrb[2].mxu0 }
 0x128   :  { %v531_v42 = vadd.f32 %v530_v41, %v461_v40  ;;  %v532_v43 = vpop.f32.mrb[3].mxu0 }
 0x129   :  { %v600_v14 = vpop.f32.mrb[2].mxu1 }
 0x12a   :  { %v601_v45 = vadd.f32 %v600_v14, %v531_v42  ;;  %v602_v46 = vpop.f32.mrb[3].mxu1 }
 0x12c   :  { %v604_v47 = vadd.f32 %v601_v45, %v279_v44 }
 0x12e   :  { %606 = vst.msk [vmem:[#allocation2] sm:$0x3] %vm40_vm1, %v604_v47 }
 0x134   :  { %v696_v50 = vpop.f32.mrb[4].mxu0 }
 0x135   :  { %v1087_v51 = vld [vmem:[#allocation2] sm:$0x3]  ;;  %v698_v52 = vpop.f32.mrb[5].mxu0 }
 0x136   :  { %v784_v22 = vmul.f32 %v875_v49, %v1087_v51  ;;  %v766_v54 = vpop.f32.mrb[4].mxu1 }
 0x137   :  { %v767_v55 = vadd.f32 %v766_v54, %v696_v50  ;;  %v768_v56 = vpop.f32.mrb[5].mxu1 }
 0x138   :  { %v785_v57 = vsel %vm40_vm1, %v784_v22, 0.0 }
 0x139   :  { %786 = vadd.xlane.f32.xlu0 %v785_v57  ;;  %v770_v58 = vadd.f32 %v767_v55, %v607_v53  ;;  %v795_v60 = vrot.slane %v785_v57, 4 }
 0x13b   :  { %771 = vst.msk [vmem:[#allocation3] sm:$0x3] %vm40_vm1, %v770_v58  ;;  %v796_v62 = vadd.f32 %v795_v60, %v785_v57 }
 0x13d   :  { %v797_v1 = vrot.slane %v796_v62, 2 }
 0x13f   :  { %v798_v4 = vadd.f32 %v797_v1, %v796_v62 }
 0x141   :  { %v799_v10 = vrot.slane %v798_v4, 1 }
 0x142   :  { %v1092_v0 = vld [vmem:[#allocation3] sm:$0x3] }
 0x143   :  { %v808_v3 = vmul.f32 %v875_v49, %v1092_v0  ;;  %v800_v6 = vadd.f32 %v799_v10, %v798_v4 }
 0x145   :  { %v809_v59 = vsel %vm40_vm1, %v808_v3, 0.0  ;;  %vm803_vm4 = vcmp.eq.f32.partialorder %v800_v6, inf  ;;  %v806_v26 = vand.u32 2147483648, %v800_v6  ;;  %vm805_vm7 = vcmp.eq.f32.partialorder %v800_v6, 0.0 }
 0x146   :  { %810 = vadd.xlane.f32.xlu0 %v809_v59  ;;  %v819_v61 = vrot.slane %v809_v59, 4 }
 0x148   :  { %v820_v63 = vadd.f32 %v819_v61, %v809_v59 }
 0x14a   :  { %v821_v2 = vrot.slane %v820_v63, 2 }
 0x14c   :  { %v822_v9 = vadd.f32 %v821_v2, %v820_v63 }
 0x14e   :  { %v823_v11 = vrot.slane %v822_v9, 1 }
 0x150   :  { %v824_v12 = vadd.f32 %v823_v11, %v822_v9 }
 0x152   :  { %vm827_vm6 = vcmp.eq.f32.partialorder %v824_v12, inf  ;;  %v830_v28 = vand.u32 2147483648, %v824_v12  ;;  %vm829_vm8 = vcmp.eq.f32.partialorder %v824_v12, 0.0 }
 0x1c6   :  { %v787_v13 = vpop.xlane.xlu0 %786 }
 0x1c7   :  { %886 = vrsqrt.f32 %v787_v13  ;;  %vm790_vm3 = vcmp.eq.f32.partialorder %v787_v13, inf  ;;  %v793_v23 = vand.u32 2147483648, %v787_v13  ;;  %vm792_vm5 = vcmp.eq.f32.partialorder %v787_v13, 0.0 }
 0x1c8   :  { %888 = vrsqrt.f32 %v800_v6 }
 0x1c9   :  { %890 = vrsqrt.f32 %v824_v12 }
 0x1d1   :  { %v887_v7 = vpop.eup %886 }
 0x1d2   :  { %v889_v15 = vpop.eup %888  ;;  %v789_v17 = vmul.f32 %v887_v7, %v787_v13 }
 0x1d3   :  { %v891_v16 = vpop.eup %890  ;;  %v811_v18 = vpop.xlane.xlu0 %810  ;;  %v802_v19 = vmul.f32 %v889_v15, %v800_v6 }
 0x1d4   :  { %892 = vrsqrt.f32 %v811_v18  ;;  %v826_v20 = vmul.f32 %v891_v16, %v824_v12  ;;  %v791_v21 = vsel %vm790_vm3, %v787_v13, %v789_v17  ;;  %vm814_vm9 = vcmp.eq.f32.partialorder %v811_v18, inf }
 0x1d5   :  { %v804_v24 = vsel %vm803_vm4, %v800_v6, %v802_v19  ;;  %v794_v25 = vsel %vm792_vm5, %v793_v23, %v791_v21  ;;  %v817_v35 = vand.u32 2147483648, %v811_v18  ;;  %vm816_vm10 = vcmp.eq.f32.partialorder %v811_v18, 0.0 }
 0x1d6   :  { %v828_v27 = vsel %vm827_vm6, %v824_v12, %v826_v20  ;;  %v807_v29 = vsel %vm805_vm7, %v806_v26, %v804_v24  ;;  %v832_v30 = vadd.f32 1e-06, %v794_v25 }
 0x1d7   :  { %v831_v31 = vsel %vm829_vm8, %v830_v28, %v828_v27  ;;  %v834_v34 = vadd.f32 1e-06, %v807_v29 }
 0x1d8   :  { %v839_v36 = vadd.f32 1e-06, %v831_v31  ;;  %894 = vrcp.f32 %v832_v30 }
 0x1d9   :  { %896 = vrcp.f32 %v834_v34 }
 0x1da   :  { %898 = vrcp.f32 %v839_v36 }
 0x1de   :  { %v893_v32 = vpop.eup %892 }
 0x1df   :  { %v813_v33 = vmul.f32 %v893_v32, %v811_v18 }
 0x1e1   :  { %v815_v37 = vsel %vm814_vm9, %v811_v18, %v813_v33 }
 0x1e2   :  { %v818_v8 = vsel %vm816_vm10, %v817_v35, %v815_v37  ;;  %v895_v39 = vpop.eup %894 }
 0x1e3   :  { %v837_v38 = vadd.f32 1e-06, %v818_v8  ;;  %v897_v40 = vpop.eup %896 }
 0x1e4   :  { %v899_v5 = vpop.eup %898  ;;  %v836_v41 = vmul.f32 %v897_v40, %v895_v39 }
 0x1e5   :  { %900 = vrcp.f32 %v837_v38 }
 0x1e6   :  { %v842_v44 = vmul.f32 %v836_v41, %v1087_v51 }
 0x1ef   :  { %v901_v42 = vpop.eup %900 }
 0x1f0   :  { %v841_v43 = vmul.f32 %v901_v42, %v899_v5 }
 0x1f2   :  { %v843_v14 = vmul.f32 %v841_v43, %v1092_v0 }
 0x1f4   :  { %v844_v45 = vmul.f32 %v843_v14, %v842_v44 }
 0x1f6   :  { %v845_v46 = vsel %vm40_vm1, %v844_v45, 0.0 }
 0x1f7   :  { %846 = vadd.xlane.f32.xlu1 %v845_v46 }
 0x284   :  { %v847_v47 = vpop.xlane.xlu1 %846 }
 0x285   :  { %v848_v48 = vrot.slane %v847_v47, 4 }
 0x287   :  { %v849_v49 = vadd.f32 %v848_v48, %v847_v47 }
 0x289   :  { %v850_v50 = vrot.slane %v849_v49, 2 }
 0x28b   :  { %v851_v52 = vadd.f32 %v850_v50, %v849_v49 }
 0x28d   :  { %v852_v22 = vrot.slane %v851_v52, 1 }
 0x28f   :  { %v853_v53 = vadd.f32 %v852_v22, %v851_v52 }
 0x291   :  { %876 = vpush %v853_v53 }
 0x2c2   :  { %s877_s5 = spop %876 }
 0x2c3   :  { %v855_v54 = vstv %s877_s5 }
 0x2c4   :  { %v856_v51 = vmul.f32 1.9073486e-06, %v855_v54 }
 0x2c6   :  { %858 = vst.msk [vmem:[#allocation9] sm:$0x1] %vm857_vm11, %v856_v51 }
 0x2c7   :  { %957 = shalt.err (!%p954_p6)
}
 0x2c8   :  { %s958_s10 = scalar_lea.hbm %s1113_s2, 16 }
 0x2c9   :  { %p959_p7 = scmp.ne.s32.totalorder %s1113_s2, %s958_s10  ;;  %p962_p8 = scmp.lt.u32.totalorder %s958_s10, %s1113_s2 }
 0x2cb   :  { %p964_p9 = pnand %p962_p8, %p959_p7 }
 0x2cd   :  { %967 = shalt.err (!%p964_p9)
}
 0x2ce   :  { %868 = dma.vmem_to_hbm [thread:$0]  %s866_s4, 16, %s1113_s2, [#allocation6]  }
 0x2cf   :  { %972 = dma.done.wait [#allocation6], 16  }
 0x2d0   :  { %973 = vsyncadd [#allocation6], 4294967280 }
 0x2d1   :  { %872 = vsyncpa [#allocation5], 1 }
 0x2d2   :  { %873 = vsyncpa [#allocation8], 1 }
 0x2d3   :  { %874 = vsyncpa [#allocation6], 1 }

</bundles_post_ra>
